<compile_context>
chip_gen: v5e
topology: v5e:2x2
jax: 0.10.0
libtpu: 0.0.40
codegen_flags: <defaults>
</compile_context>

<pallas_src>
import functools
import math
from typing import NamedTuple

import jax
import jax.numpy as jnp
from jax.experimental import pallas as pl
from jax.experimental.pallas import tpu as pltpu


LANE = 128     # lane width: pad feature dims to a multiple of this
SUBLANE = 8    # f32 sublane count: pad batch rows to a multiple of this


def _round_up(x: int, m: int) -> int:
    return ((x + m - 1) // m) * m


# ----------------------------------------------------------------------------
# Fused MLP kernel. One batch tile per grid step; all layers computed with the
# activation resident in VMEM/vregs (no inter-layer HBM round trips).
#   alpha_ref : SMEM [num_layers]              scalar PReLU weights
#   x_ref     : VMEM [TILE_N, d_in]  f32       input rows (true K, no col pad)
#   w0_ref    : VMEM [d_in, Dp]      bf16      first linear, pre-transposed
#   b0_ref    : VMEM [1, Dp]         f32
#   w_ref     : VMEM [num_rest, Dp, Dp] bf16   remaining linears, stacked
#   b_ref     : VMEM [num_rest, 1, Dp]  f32
#   o_ref     : VMEM [TILE_N, Dp]    f32       padded output tile
# Layer loop is a static Python loop (num_rest is small) -> fully unrolled.
# ----------------------------------------------------------------------------
def _fused_mlp_kernel(alpha_ref, x_ref, w0_ref, b0_ref, w_ref, b_ref, o_ref,
                      *, num_rest: int):
    # First linear: bf16 MXU matmul, f32 accumulate, f32 bias + PReLU.
    h = jnp.dot(x_ref[...].astype(jnp.bfloat16), w0_ref[...],
                preferred_element_type=jnp.float32)
    h = h + b0_ref[...]
    a0 = alpha_ref[0]
    h = jnp.where(h > 0, h, a0 * h)

    # Remaining linears (hidden->hidden ... hidden->output).
    for l in range(num_rest):
        y = jnp.dot(h.astype(jnp.bfloat16), w_ref[l],
                    preferred_element_type=jnp.float32)
        y = y + b_ref[l]
        if l < num_rest - 1:                      # PReLU on all but the last
            a = alpha_ref[l + 1]
            y = jnp.where(y > 0, y, a * y)
        h = y

    o_ref[...] = h.astype(o_ref.dtype)


# ----------------------------------------------------------------------------
# Parameter construction (mirrors MLP.__init__ / initWeights):
#   kaiming_uniform_(nonlinearity='leaky_relu', a=0): gain = sqrt(2),
#   bound = gain * sqrt(3 / fan_in); biases zero; PReLU weight = activ_init.
# Weights are stored pre-transposed as [in_features, out_features].
# ----------------------------------------------------------------------------
def init_mlp_params(key, input_dim, hidden_dim, output_dim, num_layers,
                    activ_init=0.25):
    dims = [input_dim] + [hidden_dim] * num_layers + [output_dim]
    gain = math.sqrt(2.0)
    weights, biases = [], []
    for d_in, d_out in zip(dims[:-1], dims[1:]):
        key, wk = jax.random.split(key)
        bound = gain * math.sqrt(3.0 / d_in)
        weights.append(jax.random.uniform(wk, (d_in, d_out), jnp.float32,
                                          -bound, bound))
        biases.append(jnp.zeros((d_out,), jnp.float32))
    alphas = jnp.full((num_layers,), activ_init, jnp.float32)
    return weights, biases, alphas


class PackedMLP(NamedTuple):
    w0: jax.Array       # [d_in, Dp]           bf16
    b0: jax.Array       # [1, Dp]              f32
    w_stack: jax.Array  # [num_rest, Dp, Dp]   bf16
    b_stack: jax.Array  # [num_rest, 1, Dp]    f32
    alphas: jax.Array   # [num_layers]         f32


def pack_mlp_params(weights, biases, alphas) -> PackedMLP:
    """One-time packing: zero-pad to lane-dense tiles, cast weights to bf16.

    Done at init, NOT per forward call. First-layer weight keeps its true K.
    """
    d_in = weights[0].shape[0]
    dims_rest = [w.shape[1] for w in weights]      # all output dims
    dp = max(_round_up(d, LANE) for d in dims_rest)
    num_rest = len(weights) - 1

    w0 = jnp.zeros((d_in, dp), jnp.float32)
    w0 = w0.at[:, : weights[0].shape[1]].set(weights[0]).astype(jnp.bfloat16)
    b0 = jnp.zeros((1, dp), jnp.float32).at[0, : biases[0].shape[0]].set(biases[0])

    w_stack = jnp.zeros((num_rest, dp, dp), jnp.float32)
    b_stack = jnp.zeros((num_rest, 1, dp), jnp.float32)
    for l in range(num_rest):
        w, b = weights[l + 1], biases[l + 1]
        w_stack = w_stack.at[l, : w.shape[0], : w.shape[1]].set(w)
        b_stack = b_stack.at[l, 0, : b.shape[0]].set(b)
    w_stack = w_stack.astype(jnp.bfloat16)
    # TODO(synk): for very large L / Dp (v7x 64 MiB VMEM) switch to per-layer
    # streaming (memory_space=pl.ANY + double-buffered DMA) instead of keeping
    # the whole stack resident. At these sizes the stack is < 1 MiB.
    return PackedMLP(w0=w0, b0=b0, w_stack=w_stack, b_stack=b_stack,
                     alphas=jnp.asarray(alphas, jnp.float32))


# ----------------------------------------------------------------------------
# Forward: pad batch rows, one pallas_call for the entire MLP, slice result.
# ----------------------------------------------------------------------------
@functools.partial(jax.jit, static_argnums=(2,))
def mlp_forward(x, params: PackedMLP, d_out: int):
    n, d_in = x.shape
    dp = params.w0.shape[1]
    num_rest = params.w_stack.shape[0]

    # Batch tiling: big tiles feed the MXU more rows; small batches stay 1 tile.
    tile_n = 128 if n >= 128 else _round_up(n, SUBLANE)
    n_pad = _round_up(n, tile_n)
    if n_pad != n:
        x = jnp.pad(x, ((0, n_pad - n), (0, 0)))

    kernel = functools.partial(_fused_mlp_kernel, num_rest=num_rest)
    out_pad = pl.pallas_call(
        kernel,
        out_shape=jax.ShapeDtypeStruct((n_pad, dp), jnp.float32),
        grid=(n_pad // tile_n,),
        in_specs=[
            pl.BlockSpec(memory_space=pltpu.MemorySpace.SMEM),        # alphas
            pl.BlockSpec((tile_n, d_in), lambda i: (i, 0)),           # x rows
            pl.BlockSpec((d_in, dp), lambda i: (0, 0)),               # w0 (resident)
            pl.BlockSpec((1, dp), lambda i: (0, 0)),                  # b0
            pl.BlockSpec((num_rest, dp, dp), lambda i: (0, 0, 0)),    # w_stack
            pl.BlockSpec((num_rest, 1, dp), lambda i: (0, 0, 0)),     # b_stack
        ],
        out_specs=pl.BlockSpec((tile_n, dp), lambda i: (i, 0)),
        compiler_params=pltpu.CompilerParams(
            dimension_semantics=("parallel",)),                       # v7x: 2 TCs
    )(params.alphas, x, params.w0, params.b0, params.w_stack, params.b_stack)

    return out_pad[:n, :d_out]


# ----------------------------------------------------------------------------
# Pure-JAX f32 reference (unpadded) for a correctness check.
# ----------------------------------------------------------------------------
def mlp_reference(x, weights, biases, alphas):
    h = x
    L = len(weights)
    for l in range(L):
        h = h @ weights[l] + biases[l]
        if l < L - 1:
            h = jnp.where(h > 0, h, alphas[l] * h)
    return h


if __name__ == "__main__":
    # Shapes consistent with MLP(input_dim=32, hidden_dim=32, output_dim=16,
    # num_layers=3, dropout_rate=0.1) applied to a [8, 32] batch (eval mode).
    batch, input_dim, hidden_dim, output_dim, num_layers = 8, 32, 32, 16, 3

    key = jax.random.PRNGKey(0)
    key, xk = jax.random.split(key)
    x = jax.random.normal(xk, (batch, input_dim), jnp.float32)

    weights, biases, alphas = init_mlp_params(
        key, input_dim, hidden_dim, output_dim, num_layers, activ_init=0.25)

    packed = pack_mlp_params(weights, biases, alphas)   # once, at init time

    out = mlp_forward(x, packed, output_dim)
    out = jax.block_until_ready(out)

    ref = mlp_reference(x, weights, biases, alphas)
    assert out.shape == (batch, output_dim)
    # bf16 MXU operands with f32 accumulation: loosened tolerance vs f32 ref.
    assert jnp.allclose(out, ref, atol=3e-2, rtol=3e-2), \
        float(jnp.max(jnp.abs(out - ref)))

    print("KERNEL_OK")
</pallas_src>

<mosaic_0001>
module attributes {stable_mosaic.version = 11 : i64} {
  func.func @_fused_mlp_kernel(%arg0: i32, %arg1: memref<3xf32, #tpu.memory_space<smem>>, %arg2: memref<8x32xf32, #tpu.memory_space<vmem>>, %arg3: memref<32x128xbf16, #tpu.memory_space<vmem>>, %arg4: memref<1x128xf32, #tpu.memory_space<vmem>>, %arg5: memref<3x128x128xbf16, #tpu.memory_space<vmem>>, %arg6: memref<3x1x128xf32, #tpu.memory_space<vmem>>, %arg7: memref<8x128xf32, #tpu.memory_space<vmem>>) attributes {dimension_semantics = [#tpu.dimension_semantics<parallel>], iteration_bounds = array<i64: 1>, scalar_prefetch = 0 : i64, scratch_operands = 0 : i64, tpu.core_type = #tpu.core_type<tc>, window_params = [{transform_indices = @transform_0, window_bounds = array<i64: 3>}, {transform_indices = @transform_1, window_bounds = array<i64: 8, 32>}, {pipeline_mode = #tpu.pipeline_mode<synchronous>, transform_indices = @transform_2, window_bounds = array<i64: 32, 128>}, {pipeline_mode = #tpu.pipeline_mode<synchronous>, transform_indices = @transform_3, window_bounds = array<i64: 1, 128>}, {pipeline_mode = #tpu.pipeline_mode<synchronous>, transform_indices = @transform_4, window_bounds = array<i64: 3, 128, 128>}, {pipeline_mode = #tpu.pipeline_mode<synchronous>, transform_indices = @transform_5, window_bounds = array<i64: 3, 1, 128>}, {transform_indices = @transform_6, window_bounds = array<i64: 8, 128>}]} {
    %c0 = arith.constant 0 : index
    %c0_0 = arith.constant 0 : index
    %0 = vector.load %arg2[%c0, %c0_0] : memref<8x32xf32, #tpu.memory_space<vmem>>, vector<8x32xf32>
    %1 = arith.truncf %0 : vector<8x32xf32> to vector<8x32xbf16>
    %c0_1 = arith.constant 0 : index
    %c0_2 = arith.constant 0 : index
    %2 = vector.load %arg3[%c0_1, %c0_2] : memref<32x128xbf16, #tpu.memory_space<vmem>>, vector<32x128xbf16>
    %cst = arith.constant dense<0.000000e+00> : vector<8x128xf32>
    %3 = tpu.matmul %1, %2, %cst {dimension_numbers = #tpu.dot_dimension_numbers<[1], [0], [0], [1], [0, 0, 1, 1], [], []>} : vector<8x32xbf16>, vector<32x128xbf16>, vector<8x128xf32> -> vector<8x128xf32>
    %c0_3 = arith.constant 0 : index
    %c0_4 = arith.constant 0 : index
    %4 = vector.load %arg4[%c0_3, %c0_4] : memref<1x128xf32, #tpu.memory_space<vmem>>, vector<1x128xf32>
    %5 = vector.broadcast %4 : vector<1x128xf32> to vector<8x128xf32>
    %6 = arith.addf %3, %5 : vector<8x128xf32>
    %c0_5 = arith.constant 0 : index
    %7 = memref.load %arg1[%c0_5] : memref<3xf32, #tpu.memory_space<smem>>
    %cst_6 = arith.constant 0.000000e+00 : f32
    %8 = vector.broadcast %cst_6 : f32 to vector<8x128xf32>
    %9 = arith.cmpf ogt, %6, %8 : vector<8x128xf32>
    %10 = vector.broadcast %7 : f32 to vector<8x128xf32>
    %11 = arith.mulf %10, %6 : vector<8x128xf32>
    %12 = arith.select %9, %6, %11 : vector<8x128xi1>, vector<8x128xf32>
    %13 = arith.truncf %12 : vector<8x128xf32> to vector<8x128xbf16>
    %c0_7 = arith.constant 0 : index
    %c0_8 = arith.constant 0 : index
    %c0_9 = arith.constant 0 : index
    %14 = vector.load %arg5[%c0_7, %c0_8, %c0_9] : memref<3x128x128xbf16, #tpu.memory_space<vmem>>, vector<1x128x128xbf16>
    %15 = vector.shape_cast %14 : vector<1x128x128xbf16> to vector<128x128xbf16>
    %cst_10 = arith.constant dense<0.000000e+00> : vector<8x128xf32>
    %16 = tpu.matmul %13, %15, %cst_10 {dimension_numbers = #tpu.dot_dimension_numbers<[1], [0], [0], [1], [0, 0, 1, 1], [], []>} : vector<8x128xbf16>, vector<128x128xbf16>, vector<8x128xf32> -> vector<8x128xf32>
    %c0_11 = arith.constant 0 : index
    %c0_12 = arith.constant 0 : index
    %c0_13 = arith.constant 0 : index
    %17 = vector.load %arg6[%c0_11, %c0_12, %c0_13] : memref<3x1x128xf32, #tpu.memory_space<vmem>>, vector<1x1x128xf32>
    %18 = vector.shape_cast %17 : vector<1x1x128xf32> to vector<1x128xf32>
    %19 = vector.broadcast %18 : vector<1x128xf32> to vector<8x128xf32>
    %20 = arith.addf %16, %19 : vector<8x128xf32>
    %c1 = arith.constant 1 : index
    %21 = memref.load %arg1[%c1] : memref<3xf32, #tpu.memory_space<smem>>
    %cst_14 = arith.constant 0.000000e+00 : f32
    %22 = vector.broadcast %cst_14 : f32 to vector<8x128xf32>
    %23 = arith.cmpf ogt, %20, %22 : vector<8x128xf32>
    %24 = vector.broadcast %21 : f32 to vector<8x128xf32>
    %25 = arith.mulf %24, %20 : vector<8x128xf32>
    %26 = arith.select %23, %20, %25 : vector<8x128xi1>, vector<8x128xf32>
    %27 = arith.truncf %26 : vector<8x128xf32> to vector<8x128xbf16>
    %c1_15 = arith.constant 1 : index
    %c0_16 = arith.constant 0 : index
    %c0_17 = arith.constant 0 : index
    %28 = vector.load %arg5[%c1_15, %c0_16, %c0_17] : memref<3x128x128xbf16, #tpu.memory_space<vmem>>, vector<1x128x128xbf16>
    %29 = vector.shape_cast %28 : vector<1x128x128xbf16> to vector<128x128xbf16>
    %cst_18 = arith.constant dense<0.000000e+00> : vector<8x128xf32>
    %30 = tpu.matmul %27, %29, %cst_18 {dimension_numbers = #tpu.dot_dimension_numbers<[1], [0], [0], [1], [0, 0, 1, 1], [], []>} : vector<8x128xbf16>, vector<128x128xbf16>, vector<8x128xf32> -> vector<8x128xf32>
    %c1_19 = arith.constant 1 : index
    %c0_20 = arith.constant 0 : index
    %c0_21 = arith.constant 0 : index
    %31 = vector.load %arg6[%c1_19, %c0_20, %c0_21] : memref<3x1x128xf32, #tpu.memory_space<vmem>>, vector<1x1x128xf32>
    %32 = vector.shape_cast %31 : vector<1x1x128xf32> to vector<1x128xf32>
    %33 = vector.broadcast %32 : vector<1x128xf32> to vector<8x128xf32>
    %34 = arith.addf %30, %33 : vector<8x128xf32>
    %c2 = arith.constant 2 : index
    %35 = memref.load %arg1[%c2] : memref<3xf32, #tpu.memory_space<smem>>
    %cst_22 = arith.constant 0.000000e+00 : f32
    %36 = vector.broadcast %cst_22 : f32 to vector<8x128xf32>
    %37 = arith.cmpf ogt, %34, %36 : vector<8x128xf32>
    %38 = vector.broadcast %35 : f32 to vector<8x128xf32>
    %39 = arith.mulf %38, %34 : vector<8x128xf32>
    %40 = arith.select %37, %34, %39 : vector<8x128xi1>, vector<8x128xf32>
    %41 = arith.truncf %40 : vector<8x128xf32> to vector<8x128xbf16>
    %c2_23 = arith.constant 2 : index
    %c0_24 = arith.constant 0 : index
    %c0_25 = arith.constant 0 : index
    %42 = vector.load %arg5[%c2_23, %c0_24, %c0_25] : memref<3x128x128xbf16, #tpu.memory_space<vmem>>, vector<1x128x128xbf16>
    %43 = vector.shape_cast %42 : vector<1x128x128xbf16> to vector<128x128xbf16>
    %cst_26 = arith.constant dense<0.000000e+00> : vector<8x128xf32>
    %44 = tpu.matmul %41, %43, %cst_26 {dimension_numbers = #tpu.dot_dimension_numbers<[1], [0], [0], [1], [0, 0, 1, 1], [], []>} : vector<8x128xbf16>, vector<128x128xbf16>, vector<8x128xf32> -> vector<8x128xf32>
    %c2_27 = arith.constant 2 : index
    %c0_28 = arith.constant 0 : index
    %c0_29 = arith.constant 0 : index
    %45 = vector.load %arg6[%c2_27, %c0_28, %c0_29] : memref<3x1x128xf32, #tpu.memory_space<vmem>>, vector<1x1x128xf32>
    %46 = vector.shape_cast %45 : vector<1x1x128xf32> to vector<1x128xf32>
    %47 = vector.broadcast %46 : vector<1x128xf32> to vector<8x128xf32>
    %48 = arith.addf %44, %47 : vector<8x128xf32>
    %c0_30 = arith.constant 0 : index
    %c0_31 = arith.constant 0 : index
    %49 = vector.load %arg7[%c0_30, %c0_31] : memref<8x128xf32, #tpu.memory_space<vmem>>, vector<8x128xf32>
    tpu.vector_store %arg7[%c0_30, %c0_31], %48 {strides = array<i32>} : memref<8x128xf32, #tpu.memory_space<vmem>>, vector<8x128xf32>,
    return
  }
  func.func @transform_0(%arg0: i32) -> i32 {
    %c0_i32 = arith.constant 0 : i32
    %c0_i32_0 = arith.constant 0 : i32
    return %c0_i32 : i32
  }
  func.func @transform_1(%arg0: i32) -> (i32, i32) {
    %c0_i32 = arith.constant 0 : i32
    %c0_i32_0 = arith.constant 0 : i32
    return %arg0, %c0_i32 : i32, i32
  }
  func.func @transform_2(%arg0: i32) -> (i32, i32) {
    %c0_i32 = arith.constant 0 : i32
    %c0_i32_0 = arith.constant 0 : i32
    %c0_i32_1 = arith.constant 0 : i32
    return %c0_i32, %c0_i32_0 : i32, i32
  }
  func.func @transform_3(%arg0: i32) -> (i32, i32) {
    %c0_i32 = arith.constant 0 : i32
    %c0_i32_0 = arith.constant 0 : i32
    %c0_i32_1 = arith.constant 0 : i32
    return %c0_i32, %c0_i32_0 : i32, i32
  }
  func.func @transform_4(%arg0: i32) -> (i32, i32, i32) {
    %c0_i32 = arith.constant 0 : i32
    %c0_i32_0 = arith.constant 0 : i32
    %c0_i32_1 = arith.constant 0 : i32
    %c0_i32_2 = arith.constant 0 : i32
    return %c0_i32, %c0_i32_0, %c0_i32_1 : i32, i32, i32
  }
  func.func @transform_5(%arg0: i32) -> (i32, i32, i32) {
    %c0_i32 = arith.constant 0 : i32
    %c0_i32_0 = arith.constant 0 : i32
    %c0_i32_1 = arith.constant 0 : i32
    %c0_i32_2 = arith.constant 0 : i32
    return %c0_i32, %c0_i32_0, %c0_i32_1 : i32, i32, i32
  }
  func.func @transform_6(%arg0: i32) -> (i32, i32) {
    %c0_i32 = arith.constant 0 : i32
    %c0_i32_0 = arith.constant 0 : i32
    return %arg0, %c0_i32 : i32, i32
  }
}

</mosaic_0001>

<bundles_post_ra>
// kernel: mlp_forward.1
= control target key start
LH: loop header
LB: loop body
LE: loop exit
PB: predicated region body
PF: predicated region fallthrough
CT: control target
= control target key end

     0   :  { %11 = vsyncpa [#allocation5], 0  ;;  %s781_s0 = inlined_call_operand.vmem [shape: f32[3], index: 0, kind: input, shape index: {}]   ;;  %s782_s1 = inlined_call_operand.hbm [shape: f32[8,32], index: 1, kind: input, shape index: {}]   ;;  %s783_s2 = inlined_call_operand.hbm [shape: bf16[32,128], index: 2, kind: input, shape index: {}]   ;;  %s784_s3 = inlined_call_operand.hbm [shape: f32[1,128], index: 3, kind: input, shape index: {}]   ;;  %s785_s4 = inlined_call_operand.hbm [shape: bf16[3,128,128], index: 4, kind: input, shape index: {}]   ;;  %s786_s5 = inlined_call_operand.vmem [shape: f32[3,1,128], index: 5, kind: input, shape index: {}]   ;;  %s787_s6 = inlined_call_operand.hbm [shape: f32[8,128], index: 6, kind: output, shape index: {}]  }
   0x1   :  { %12 = vsyncpa [#allocation3], 0 }
   0x2   :  { %13 = vsyncpa [#allocation8], 0 }
   0x3   :  { %14 = vsyncpa [#allocation11], 0  ;;  %s40_s23 = sshll.u32 %s783_s2, 4  ;;  %s41_s23 = int_to_ptr.hbm [resolvable:$true] %s40_s23 }
   0x4   :  { %15 = vsyncpa [#allocation4], 0  ;;  %s711_s24 = smov [#allocation7]   ;;  %s21_s28 = sshll.u32 %s781_s0, 4  ;;  %s22_s28 = int_to_ptr.vmem [resolvable:$true] %s21_s28 }
   0x5   :  { %s42_s25 = sshll.u32 %s711_s24, 4  ;;  %s712_s29 = smov 64   ;;  %s43_s25 = int_to_ptr.vmem [resolvable:$true] %s42_s25 }
   0x6   :  { %s713_s30 = smov 4   ;;  %s714_s7 = smov [#allocation2]  }
   0x7   :  { %48 = dma.hbm_to_vmem [thread:$0]  %s41_s23, 256, %s43_s25, [#allocation8], %s712_s29, %s712_s29, %s713_s30  }
   0x8   :  { %24 = dma.vmem_to_smem %s22_s28, 16, %s714_s7, [#allocation5]  }
   0x9   :  { %s30_s10 = sshll.u32 %s782_s1, 4  ;;  %s715_s2 = smov [#allocation6]   ;;  %s31_s10 = int_to_ptr.hbm [resolvable:$true] %s30_s10 }
   0xa   :  { %s32_s11 = sshll.u32 %s715_s2, 4  ;;  %s54_s14 = sshll.u32 %s784_s3, 4  ;;  %s33_s11 = int_to_ptr.vmem [resolvable:$true] %s32_s11  ;;  %s55_s14 = int_to_ptr.hbm [resolvable:$true] %s54_s14 }
   0xb   :  { %35 = dma.hbm_to_vmem [thread:$0]  %s31_s10, 128, %s33_s11, [#allocation3]  }
   0xc   :  { %s716_s0 = smov [#allocation9]   ;;  %s64_s18 = sshll.u32 %s785_s4, 4  ;;  %s65_s18 = int_to_ptr.hbm [resolvable:$true] %s64_s18 }
   0xd   :  { %s56_s15 = sshll.u32 %s716_s0, 4  ;;  %s717_s1 = smov [#allocation10]   ;;  %s57_s15 = int_to_ptr.vmem [resolvable:$true] %s56_s15 }
   0xe   :  { %59 = dma.hbm_to_vmem [thread:$0]  %s55_s14, 16, %s57_s15, [#allocation8]  }
   0xf   :  { %s66_s19 = sshll.u32 %s717_s1, 4  ;;  %s67_s19 = int_to_ptr.vmem [resolvable:$true] %s66_s19 }
  0x10   :  { %72 = dma.hbm_to_vmem [thread:$0]  %s65_s18, 3072, %s67_s19, [#allocation11], %s712_s29, %s712_s29, %s713_s30  }
  0x11   :  { %701 = dma.done.wait [#allocation5], 16  }
  0x12   :  { %702 = vsyncadd [#allocation5], 4294967280 }
  0x13   :  { %703 = dma.done.wait [#allocation3], 128  }
  0x14   :  { %704 = vsyncadd [#allocation3], 4294967168 }
  0x15   :  { %705 = dma.done.wait [#allocation8], 272  }
  0x16   :  { %706 = vsyncadd [#allocation8], 4294967024 }
  0x17   :  { %707 = dma.done.wait [#allocation11], 3072  }
  0x18   :  { %708 = vsyncadd [#allocation11], 4294964224 }
  0x19   :  { %95 = sfence }
  0x1a   :  { %v532_v0 = vld [vmem:[#allocation7 + $0x8] sm:$0xff]  ;;  %v531_v2 = vld [vmem:[#allocation7] sm:$0xff]  ;;  %v97_v3 = vld [vmem:[#allocation6] sm:$0xff]  ;;  %vm119_vm0 = vcmask 261120   ;;  %s136_s3 = sld [smem:[#allocation2]]  ;;  %s718_s27 = smov [#allocation12]  }
  0x1b   :  { %v540_v1 = vld [vmem:[#allocation10 + $0x38] sm:$0xff]  ;;  %129 = vmatpush.bf16.msra.mxu0 %v532_v0  ;;  %v539_v4 = vld [vmem:[#allocation10 + $0x30] sm:$0xff]  ;;  %v98_v5 = vpack.c.bf16 %v97_v3, %v97_v3  ;;  %v538_v6 = vld [vmem:[#allocation10 + $0x28] sm:$0xff]  ;;  %s463_s4 = sld [smem:[#allocation2 + $0x1]]  ;;  %s407_s28 = sshll.u32 %s718_s27, 4  ;;  %s408_s28 = int_to_ptr.vmem [resolvable:$true] %s407_s28 }
  0x1c   :  { %210 = vmatpush.bf16.msra.mxu1 %v540_v1  ;;  %v537_v7 = vld [vmem:[#allocation10 + $0x20] sm:$0xff]  ;;  %v536_v8 = vld [vmem:[#allocation10 + $0x18] sm:$0xff]  ;;  %v535_v9 = vld [vmem:[#allocation10 + $0x10] sm:$0xff]  ;;  %s497_s22 = sld [smem:[#allocation2 + $0x2]]  ;;  %s409_s7 = sshll.u32 %s787_s6, 4  ;;  %s410_s7 = int_to_ptr.hbm [resolvable:$true] %s409_s7 }
  0x1d   :  { %v534_v10 = vld [vmem:[#allocation10 + $0x8] sm:$0xff]  ;;  %v533_v11 = vld [vmem:[#allocation10] sm:$0xff]  ;;  %v548_v12 = vld [vmem:[#allocation10 + $0x78] sm:$0xff] }
  0x1e   :  { %299 = vmatpush.bf16.msra.mxu2 %v548_v12  ;;  %v547_v13 = vld [vmem:[#allocation10 + $0x70] sm:$0xff]  ;;  %v546_v14 = vld [vmem:[#allocation10 + $0x68] sm:$0xff]  ;;  %v545_v15 = vld [vmem:[#allocation10 + $0x60] sm:$0xff] }
  0x1f   :  { %130 = vmatpush.bf16.msra.mxu0 %v531_v2  ;;  %v544_v16 = vld [vmem:[#allocation10 + $0x58] sm:$0xff]  ;;  %v543_v17 = vld [vmem:[#allocation10 + $0x50] sm:$0xff]  ;;  %v542_v26 = vld [vmem:[#allocation10 + $0x48] sm:$0xff] }
  0x20   :  { %211 = vmatpush.bf16.msra.mxu1 %v539_v4  ;;  %v565_v18 = vld [vmem:[#allocation9] ss:$0 sm:$0xff]  ;;  %v138_v20 = vstv %s136_s3  ;;  %v541_v27 = vld [vmem:[#allocation10 + $0x40] sm:$0xff]  ;;  %v555_v29 = vld [vmem:[#allocation10 + $0xb0] sm:$0xff] }
  0x21   :  { %v556_v28 = vld [vmem:[#allocation10 + $0xb8] sm:$0xff]  ;;  %v554_v30 = vld [vmem:[#allocation10 + $0xa8] sm:$0xff]  ;;  %v553_v31 = vld [vmem:[#allocation10 + $0xa0] sm:$0xff]  ;;  %v225_v36 = vstv %s463_s4 }
  0x22   :  { %430 = vmatmul.msk.bf16.vlgmr.msra.gmra.mxu0 %vm119_vm0, %v98_v5  ;;  %300 = vmatpush.bf16.msra.mxu2 %v547_v13  ;;  %v552_v32 = vld [vmem:[#allocation10 + $0x98] sm:$0xff]  ;;  %v551_v33 = vld [vmem:[#allocation10 + $0x90] sm:$0xff]  ;;  %v566_v34 = vld [vmem:[%s786_s5] ss:$0 sm:$0xff]  ;;  %v314_v46 = vstv %s497_s22 }
  0x23   :  { %388 = vmatpush.bf16.msra.mxu3 %v556_v28  ;;  %v550_v42 = vld [vmem:[#allocation10 + $0x88] sm:$0xff]  ;;  %v549_v43 = vld [vmem:[#allocation10 + $0x80] sm:$0xff] }
  0x24   :  { %212 = vmatpush.bf16.msra.mxu1 %v538_v6  ;;  %v567_v44 = vld [vmem:[%s786_s5 + $0x1] ss:$0 sm:$0xff]  ;;  %v568_v52 = vld [vmem:[%s786_s5 + $0x2] ss:$0 sm:$0xff] }
  0x26   :  { %301 = vmatpush.bf16.msra.mxu2 %v546_v14 }
  0x27   :  { %389 = vmatpush.bf16.msra.mxu3 %v555_v29 }
  0x28   :  { %213 = vmatpush.bf16.msra.mxu1 %v537_v7 }
  0x2a   :  { %302 = vmatpush.bf16.msra.mxu2 %v545_v15 }
  0x2b   :  { %390 = vmatpush.bf16.msra.mxu3 %v554_v30 }
  0x2c   :  { %214 = vmatpush.bf16.msra.mxu1 %v536_v8 }
  0x2e   :  { %303 = vmatpush.bf16.msra.mxu2 %v544_v16 }
  0x2f   :  { %391 = vmatpush.bf16.msra.mxu3 %v553_v31 }
  0x30   :  { %215 = vmatpush.bf16.msra.mxu1 %v535_v9 }
  0x32   :  { %304 = vmatpush.bf16.msra.mxu2 %v543_v17 }
  0x33   :  { %392 = vmatpush.bf16.msra.mxu3 %v552_v32 }
  0x34   :  { %216 = vmatpush.bf16.msra.mxu1 %v534_v10 }
  0x36   :  { %305 = vmatpush.bf16.msra.mxu2 %v542_v26 }
  0x37   :  { %393 = vmatpush.bf16.msra.mxu3 %v551_v33 }
  0x38   :  { %217 = vmatpush.bf16.msra.mxu1 %v533_v11 }
  0x3a   :  { %306 = vmatpush.bf16.msra.mxu2 %v541_v27 }
  0x3b   :  { %394 = vmatpush.bf16.msra.mxu3 %v550_v42 }
  0x3f   :  { %395 = vmatpush.bf16.msra.mxu3 %v549_v43 }
  0x9f   :  { %v132_v19 = vpop.f32.mrf.mxu0 }
  0xa0   :  { %v133_v21 = vadd.f32 %v565_v18, %v132_v19 }
  0xa2   :  { %v139_v22 = vmul.f32 %v138_v20, %v133_v21  ;;  %vm137_vm1 = vcmp.gt.f32.partialorder %v133_v21, 0.0 }
  0xa4   :  { %v140_v23 = vsel %vm137_vm1, %v133_v21, %v139_v22 }
  0xa5   :  { %v141_v24 = vpack.c.bf16 %v140_v23, %v140_v23 }
  0xa7   :  { %v134_v25 = vpop.f32.mrf.mxu0  ;;  %218 = vmatmul.bf16.vlgmr.msra.gmra.mxu1 %v141_v24 }
 0x124   :  { %v219_v35 = vpop.f32.mrf.mxu1 }
 0x125   :  { %v220_v37 = vadd.f32 %v566_v34, %v219_v35 }
 0x127   :  { %v226_v38 = vmul.f32 %v225_v36, %v220_v37  ;;  %vm224_vm2 = vcmp.gt.f32.partialorder %v220_v37, 0.0 }
 0x129   :  { %v227_v39 = vsel %vm224_vm2, %v220_v37, %v226_v38 }
 0x12a   :  { %v228_v40 = vpack.c.bf16 %v227_v39, %v227_v39 }
 0x12c   :  { %v221_v41 = vpop.f32.mrf.mxu1  ;;  %307 = vmatmul.bf16.vlgmr.msra.gmra.mxu2 %v228_v40 }
 0x1af   :  { %v308_v45 = vpop.f32.mrf.mxu2 }
 0x1b0   :  { %v309_v47 = vadd.f32 %v567_v44, %v308_v45 }
 0x1b2   :  { %v315_v48 = vmul.f32 %v314_v46, %v309_v47  ;;  %vm313_vm3 = vcmp.gt.f32.partialorder %v309_v47, 0.0 }
 0x1b4   :  { %v316_v49 = vsel %vm313_vm3, %v309_v47, %v315_v48 }
 0x1b5   :  { %v317_v50 = vpack.c.bf16 %v316_v49, %v316_v49 }
 0x1b7   :  { %v310_v51 = vpop.f32.mrf.mxu2  ;;  %396 = vmatmul.bf16.vlgmr.msra.gmra.mxu3 %v317_v50 }
 0x23a   :  { %v397_v53 = vpop.f32.mrf.mxu3 }
 0x23b   :  { %v398_v54 = vadd.f32 %v568_v52, %v397_v53 }
 0x23d   :  { %401 = vst [vmem:[#allocation12] sm:$0xff] %v398_v54 }
 0x23e   :  { %412 = dma.vmem_to_hbm [thread:$0]  %s408_s28, 128, %s410_s7, [#allocation4]  }
 0x242   :  { %v399_v55 = vpop.f32.mrf.mxu3 }
 0x243   :  { %709 = dma.done.wait [#allocation4], 128  }
 0x244   :  { %710 = vsyncadd [#allocation4], 4294967168 }
 0x245   :  { %417 = vsyncpa [#allocation3], 1 }
 0x246   :  { %418 = vsyncpa [#allocation8], 1 }
 0x247   :  { %419 = vsyncpa [#allocation11], 1 }
 0x248   :  { %420 = vsyncpa [#allocation4], 1 }
 0x249   :  { %421 = vsyncpa [#allocation5], 1 }

</bundles_post_ra>
